<compile_context>
chip_gen: v5e
topology: v5e:2x2
jax: 0.10.0
libtpu: 0.0.40
codegen_flags: <defaults>
</compile_context>

<pallas_src>
import functools

import jax
import jax.numpy as jnp
from jax.experimental import pallas as pl
from jax.experimental.pallas import tpu as pltpu  # noqa: F401  (TPU backend)


def _sigmoid_linear_kernel(x_ref, o_ref, *, inv_two_range):
    """Element-wise piecewise-linear sigmoid on a box-domain value.

    x_ref : (2, B, D) f32 -- x[0] = center c, x[1] = radius delta
    o_ref : (2, B, D) f32 -- o[0] = new center, o[1] = new radius
    """
    c = x_ref[0]          # (B, D)
    delta = x_ref[1]      # (B, D)

    left = c - delta
    right = c + delta

    # f(z) = clamp(z / (2 * sig_range) + 0.5, 0, 1)  -- VPU only, no MXU/EUP.
    new_left = jnp.clip(left * inv_two_range + 0.5, 0.0, 1.0)
    new_right = jnp.clip(right * inv_two_range + 0.5, 0.0, 1.0)

    o_ref[0] = 0.5 * (new_left + new_right)   # new center
    o_ref[1] = 0.5 * (new_right - new_left)   # new radius (>= 0: f monotone)


@functools.lru_cache(maxsize=None)
def _build_sigmoid_linear(B, D, sig_range, dtype_name):
    """Build (once) and cache the jitted pallas_call for a shape/config."""
    dtype = jnp.dtype(dtype_name)
    inv_two_range = 1.0 / (2.0 * float(sig_range))
    itemsize = dtype.itemsize

    call = pl.pallas_call(
        functools.partial(_sigmoid_linear_kernel, inv_two_range=inv_two_range),
        out_shape=jax.ShapeDtypeStruct((2, B, D), dtype),
        # No grid: the whole packed box (2*B*D elements) is one VMEM-resident
        # block -- tiny compared to any chip's VMEM (v7x's 64 MiB included).
        in_specs=[pl.BlockSpec((2, B, D), lambda: (0, 0, 0))],
        out_specs=pl.BlockSpec((2, B, D), lambda: (0, 0, 0)),
        cost_estimate=pl.CostEstimate(
            flops=10 * B * D,
            transcendentals=0,
            bytes_accessed=4 * B * D * itemsize,   # (2,B,D) in + (2,B,D) out
        ),
    )

    @jax.jit
    def run(c, delta):
        packed = jnp.stack([c, delta], axis=0)     # (2, B, D): one input DMA
        out = call(packed)                         # (2, B, D): one output DMA
        return out[0], out[1]

    return run


def sigmoid_linear_box(c, delta, sig_range):
    """Apply the piecewise-linear sigmoid to the box (c, delta)."""
    B, D = c.shape
    run = _build_sigmoid_linear(B, D, float(sig_range), str(c.dtype))
    return run(c, delta)


class SigmoidLinear:
    """JAX/Pallas port of gpu_DSE.modules.SigmoidLinear.

    The abstract-domain value `x` is represented as a (center, delta) tuple of
    (B, D) float32 arrays.  forward() returns the transformed (center, delta).
    """
    # TODO(synk): the exact slope convention of gpu_DSE's domain.sigmoid_linear
    # is not in the provided spec excerpt; we use the standard hard-sigmoid
    # surrogate mapping [-sig_range, sig_range] linearly onto [0, 1].

    def __init__(self, sig_range):
        self.sig_range = float(sig_range)

    def forward(self, x):
        c, delta = x
        return sigmoid_linear_box(c, delta, self.sig_range)

    __call__ = forward


def _reference(c, delta, sig_range):
    f = lambda z: jnp.clip(z / (2.0 * sig_range) + 0.5, 0.0, 1.0)
    nl, nr = f(c - delta), f(c + delta)
    return 0.5 * (nl + nr), 0.5 * (nr - nl)


if __name__ == "__main__":
    key = jax.random.PRNGKey(0)
    B, D = 2, 16
    sig_range = 4.0

    kc, kd = jax.random.split(key)
    c = 3.0 * jax.random.normal(kc, (B, D), dtype=jnp.float32)
    delta = jnp.abs(jax.random.normal(kd, (B, D), dtype=jnp.float32))

    mod = SigmoidLinear(sig_range)
    new_c, new_delta = mod((c, delta))
    new_c = jax.block_until_ready(new_c)
    new_delta = jax.block_until_ready(new_delta)

    ref_c, ref_delta = _reference(c, delta, sig_range)
    assert jnp.allclose(new_c, ref_c, atol=1e-6), "center mismatch"
    assert jnp.allclose(new_delta, ref_delta, atol=1e-6), "radius mismatch"

    # Second call: hits the lru_cache'd jitted pallas_call (no retrace).
    new_c2, new_delta2 = mod((c, delta))
    jax.block_until_ready(new_c2)
    jax.block_until_ready(new_delta2)

    print("KERNEL_OK")
</pallas_src>

<mosaic_0001>
module attributes {stable_mosaic.version = 11 : i64} {
  func.func @_sigmoid_linear_kernel(%arg0: memref<2x2x16xf32, #tpu.memory_space<vmem>>, %arg1: memref<2x2x16xf32, #tpu.memory_space<vmem>>) attributes {dimension_semantics = [], scalar_prefetch = 0 : i64, scratch_operands = 0 : i64, tpu.core_type = #tpu.core_type<tc>} {
    %c0 = arith.constant 0 : index
    %c0_0 = arith.constant 0 : index
    %c0_1 = arith.constant 0 : index
    %0 = vector.load %arg0[%c0, %c0_0, %c0_1] : memref<2x2x16xf32, #tpu.memory_space<vmem>>, vector<1x2x16xf32>
    %1 = vector.shape_cast %0 : vector<1x2x16xf32> to vector<2x16xf32>
    %c1 = arith.constant 1 : index
    %c0_2 = arith.constant 0 : index
    %c0_3 = arith.constant 0 : index
    %2 = vector.load %arg0[%c1, %c0_2, %c0_3] : memref<2x2x16xf32, #tpu.memory_space<vmem>>, vector<1x2x16xf32>
    %3 = vector.shape_cast %2 : vector<1x2x16xf32> to vector<2x16xf32>
    %4 = arith.subf %1, %3 : vector<2x16xf32>
    %5 = arith.addf %1, %3 : vector<2x16xf32>
    %cst = arith.constant 1.250000e-01 : f32
    %6 = vector.broadcast %cst : f32 to vector<2x16xf32>
    %7 = arith.mulf %4, %6 : vector<2x16xf32>
    %cst_4 = arith.constant 5.000000e-01 : f32
    %8 = vector.broadcast %cst_4 : f32 to vector<2x16xf32>
    %9 = arith.addf %7, %8 : vector<2x16xf32>
    %cst_5 = arith.constant 0.000000e+00 : f32
    %cst_6 = arith.constant 1.000000e+00 : f32
    %10 = vector.broadcast %cst_5 : f32 to vector<2x16xf32>
    %11 = arith.maximumf %10, %9 : vector<2x16xf32>
    %12 = vector.broadcast %cst_6 : f32 to vector<2x16xf32>
    %13 = arith.minimumf %12, %11 : vector<2x16xf32>
    %cst_7 = arith.constant 1.250000e-01 : f32
    %14 = vector.broadcast %cst_7 : f32 to vector<2x16xf32>
    %15 = arith.mulf %5, %14 : vector<2x16xf32>
    %cst_8 = arith.constant 5.000000e-01 : f32
    %16 = vector.broadcast %cst_8 : f32 to vector<2x16xf32>
    %17 = arith.addf %15, %16 : vector<2x16xf32>
    %cst_9 = arith.constant 0.000000e+00 : f32
    %cst_10 = arith.constant 1.000000e+00 : f32
    %18 = vector.broadcast %cst_9 : f32 to vector<2x16xf32>
    %19 = arith.maximumf %18, %17 : vector<2x16xf32>
    %20 = vector.broadcast %cst_10 : f32 to vector<2x16xf32>
    %21 = arith.minimumf %20, %19 : vector<2x16xf32>
    %22 = arith.addf %13, %21 : vector<2x16xf32>
    %cst_11 = arith.constant 5.000000e-01 : f32
    %23 = vector.broadcast %cst_11 : f32 to vector<2x16xf32>
    %24 = arith.mulf %23, %22 : vector<2x16xf32>
    %c0_12 = arith.constant 0 : index
    %c0_13 = arith.constant 0 : index
    %c0_14 = arith.constant 0 : index
    %25 = vector.load %arg1[%c0_12, %c0_13, %c0_14] : memref<2x2x16xf32, #tpu.memory_space<vmem>>, vector<1x2x16xf32>
    %26 = vector.shape_cast %25 : vector<1x2x16xf32> to vector<2x16xf32>
    %27 = vector.shape_cast %24 : vector<2x16xf32> to vector<1x2x16xf32>
    tpu.vector_store %arg1[%c0_12, %c0_13, %c0_14], %27 {strides = array<i32>} : memref<2x2x16xf32, #tpu.memory_space<vmem>>, vector<1x2x16xf32>,
    %28 = arith.subf %21, %13 : vector<2x16xf32>
    %cst_15 = arith.constant 5.000000e-01 : f32
    %29 = vector.broadcast %cst_15 : f32 to vector<2x16xf32>
    %30 = arith.mulf %29, %28 : vector<2x16xf32>
    %c1_16 = arith.constant 1 : index
    %c0_17 = arith.constant 0 : index
    %c0_18 = arith.constant 0 : index
    %31 = vector.load %arg1[%c1_16, %c0_17, %c0_18] : memref<2x2x16xf32, #tpu.memory_space<vmem>>, vector<1x2x16xf32>
    %32 = vector.shape_cast %31 : vector<1x2x16xf32> to vector<2x16xf32>
    %33 = vector.shape_cast %30 : vector<2x16xf32> to vector<1x2x16xf32>
    tpu.vector_store %arg1[%c1_16, %c0_17, %c0_18], %33 {strides = array<i32>} : memref<2x2x16xf32, #tpu.memory_space<vmem>>, vector<1x2x16xf32>,
    return
  }
}

</mosaic_0001>

<bundles_post_ra>
// kernel: run.1
= control target key start
LH: loop header
LB: loop body
LE: loop exit
PB: predicated region body
PF: predicated region fallthrough
CT: control target
= control target key end

     0   :  { %vm23_vm0 = vcmask 123904   ;;  %s57_s0 = inlined_call_operand.vmem [shape: f32[2,2,16], index: 0, kind: input, shape index: {}]   ;;  %s58_s1 = inlined_call_operand.vmem [shape: f32[2,2,16], index: 1, kind: output, shape index: {}]  }
   0x1   :  { %v8_v0 = vld [vmem:[%s57_s0] sm:$0x3]  ;;  %v33_v1 = vld [vmem:[%s57_s0 + $0x2] sm:$0x3] }
   0x2   :  { %v11_v2 = vsub.f32 %v8_v0, %v33_v1  ;;  %v12_v3 = vadd.f32 %v33_v1, %v8_v0 }
   0x4   :  { %v13_v4 = vmul.f32 0.125, %v11_v2  ;;  %v17_v5 = vmul.f32 0.125, %v12_v3 }
   0x6   :  { %v14_v6 = vadd.f32 0.5, %v13_v4  ;;  %v18_v7 = vadd.f32 0.5, %v17_v5 }
   0x8   :  { %v15_v8 = vmax.f32 %v14_v6, 0.0  ;;  %v19_v9 = vmax.f32 %v18_v7, 0.0 }
   0xa   :  { %v16_v10 = vmin.f32 %v15_v8, 1.0  ;;  %v20_v11 = vmin.f32 %v19_v9, 1.0 }
   0xc   :  { %v21_v12 = vadd.f32 %v20_v11, %v16_v10  ;;  %v25_v13 = vsub.f32 %v20_v11, %v16_v10 }
   0xe   :  { %v22_v14 = vmul.f32 0.5, %v21_v12  ;;  %v26_v15 = vmul.f32 0.5, %v25_v13 }
  0x10   :  { %24 = vst.msk [vmem:[%s58_s1] sm:$0x3] %vm23_vm0, %v22_v14 }
  0x11   :  { %34 = vst.msk [vmem:[%s58_s1 + $0x2] sm:$0x3] %vm23_vm0, %v26_v15 }

</bundles_post_ra>
